<compile_context>
chip_gen: v7x
topology: tpu7x:2x2x1
jax: 0.10.0
libtpu: 0.0.40
codegen_flags: <defaults>
</compile_context>

<pallas_src>
import jax
import jax.numpy as jnp
from jax.experimental import pallas as pl
from jax.experimental.pallas import tpu as pltpu

INPUT_SIZE = 784
NUM_CLASSES = 10
C_PAD = 128            # lane-padded class dimension (vreg lane width)
DEFAULT_TB = 1024      # batch tile: 2 bufs x 1024 x 784 x 2B ~= 3.2 MiB, safe on v7x


def _linear_kernel(x_ref, w_ref, b_ref, o_ref):
    # x_ref: (TB, D) bf16   w_ref: (D, C_PAD) bf16   b_ref: (1, C_PAD) f32
    # o_ref: (TB, C_PAD) f32
    acc = jnp.dot(x_ref[...], w_ref[...], preferred_element_type=jnp.float32)
    o_ref[...] = (acc + b_ref[...]).astype(o_ref.dtype)


def prepare_params(weight, bias, compute_dtype=jnp.bfloat16):
    """One-time parameter prep (outside the per-step hot path).

    weight: (num_classes, input_size), bias: (num_classes,)
    Returns (w_t_pad, b_pad):
      w_t_pad: (input_size, C_PAD) compute_dtype, W.T zero-padded on the class dim
      b_pad:   (1, C_PAD) f32, bias zero-padded on the class dim
    """
    C, D = weight.shape
    w_t_pad = jnp.zeros((D, C_PAD), dtype=compute_dtype)
    w_t_pad = w_t_pad.at[:, :C].set(weight.T.astype(compute_dtype))
    b_pad = jnp.zeros((1, C_PAD), dtype=jnp.float32)
    b_pad = b_pad.at[:, :C].set(bias.astype(jnp.float32))
    return w_t_pad, b_pad


def logistic_regression_forward(x, w_t_pad, b_pad, num_classes=NUM_CLASSES,
                                tb=DEFAULT_TB):
    """x: (B, input_size); w_t_pad/b_pad from prepare_params(). Returns (B, num_classes) f32."""
    B, D = x.shape
    x = x.astype(w_t_pad.dtype)        # bf16 stream for the MXU (f32 accumulate)

    tb = min(tb, B)                    # small batches: single full-batch block
    grid = (pl.cdiv(B, tb),)

    out_pad = pl.pallas_call(
        _linear_kernel,
        out_shape=jax.ShapeDtypeStruct((B, C_PAD), jnp.float32),
        grid_spec=pltpu.PrefetchScalarGridSpec(
            num_scalar_prefetch=0,
            grid=grid,
            in_specs=[
                pl.BlockSpec((tb, D), lambda i: (i, 0)),       # stream x over batch
                pl.BlockSpec((D, C_PAD), lambda i: (0, 0)),    # W resident in VMEM
                pl.BlockSpec((1, C_PAD), lambda i: (0, 0)),    # bias resident in VMEM
            ],
            out_specs=pl.BlockSpec((tb, C_PAD), lambda i: (i, 0)),
        ),
        compiler_params=pltpu.CompilerParams(
            dimension_semantics=("parallel",)),                 # v7x: 2 TCs on batch
    )(x, w_t_pad, b_pad)

    return out_pad[:, :num_classes]    # drop zero lane padding


if __name__ == "__main__":
    key = jax.random.PRNGKey(0)
    k_x, k_w, k_b = jax.random.split(key, 3)

    B = 16  # small batch; tb=8 below exercises a multi-step (pipelined) grid
    bound = 1.0 / (INPUT_SIZE ** 0.5)
    weight = jax.random.uniform(k_w, (NUM_CLASSES, INPUT_SIZE),
                                minval=-bound, maxval=bound, dtype=jnp.float32)
    bias = jax.random.uniform(k_b, (NUM_CLASSES,),
                              minval=-bound, maxval=bound, dtype=jnp.float32)
    x = jax.random.normal(k_x, (B, INPUT_SIZE), dtype=jnp.float32)

    w_t_pad, b_pad = prepare_params(weight, bias)
    out = logistic_regression_forward(x, w_t_pad, b_pad, tb=8)
    out = jax.block_until_ready(out)

    assert out.shape == (B, NUM_CLASSES)

    # Tight check against a reference computed at the same (bf16 in, f32 acc) precision.
    x_b = x.astype(jnp.bfloat16).astype(jnp.float32)
    w_b = weight.T.astype(jnp.bfloat16).astype(jnp.float32)
    ref_bf16 = x_b @ w_b + bias
    assert jnp.allclose(out, ref_bf16, atol=1e-3, rtol=1e-3)

    # Loose sanity check against the full-f32 PyTorch-equivalent reference.
    ref_f32 = x @ weight.T + bias
    assert jnp.allclose(out, ref_f32, atol=5e-2, rtol=5e-2)

    print("KERNEL_OK")
</pallas_src>

<mosaic_0001>
module attributes {stable_mosaic.version = 11 : i64} {
  func.func @_linear_kernel(%arg0: i32, %arg1: memref<8x784xbf16, #tpu.memory_space<vmem>>, %arg2: memref<784x128xbf16, #tpu.memory_space<vmem>>, %arg3: memref<1x128xf32, #tpu.memory_space<vmem>>, %arg4: memref<8x128xf32, #tpu.memory_space<vmem>>) attributes {dimension_semantics = [#tpu.dimension_semantics<parallel>], iteration_bounds = array<i64: 2>, scalar_prefetch = 0 : i64, scratch_operands = 0 : i64, tpu.core_type = #tpu.core_type<tc>, window_params = [{transform_indices = @transform_0, window_bounds = array<i64: 8, 784>}, {pipeline_mode = #tpu.pipeline_mode<synchronous>, transform_indices = @transform_1, window_bounds = array<i64: 784, 128>}, {pipeline_mode = #tpu.pipeline_mode<synchronous>, transform_indices = @transform_2, window_bounds = array<i64: 1, 128>}, {transform_indices = @transform_3, window_bounds = array<i64: 8, 128>}]} {
    %c0 = arith.constant 0 : index
    %c0_0 = arith.constant 0 : index
    %0 = vector.load %arg1[%c0, %c0_0] : memref<8x784xbf16, #tpu.memory_space<vmem>>, vector<8x784xbf16>
    %c0_1 = arith.constant 0 : index
    %c0_2 = arith.constant 0 : index
    %1 = vector.load %arg2[%c0_1, %c0_2] : memref<784x128xbf16, #tpu.memory_space<vmem>>, vector<784x128xbf16>
    %cst = arith.constant dense<0.000000e+00> : vector<8x128xf32>
    %2 = tpu.matmul %0, %1, %cst {dimension_numbers = #tpu.dot_dimension_numbers<[1], [0], [0], [1], [0, 0, 1, 1], [], []>} : vector<8x784xbf16>, vector<784x128xbf16>, vector<8x128xf32> -> vector<8x128xf32>
    %c0_3 = arith.constant 0 : index
    %c0_4 = arith.constant 0 : index
    %3 = vector.load %arg3[%c0_3, %c0_4] : memref<1x128xf32, #tpu.memory_space<vmem>>, vector<1x128xf32>
    %4 = vector.broadcast %3 : vector<1x128xf32> to vector<8x128xf32>
    %5 = arith.addf %2, %4 : vector<8x128xf32>
    %c0_5 = arith.constant 0 : index
    %c0_6 = arith.constant 0 : index
    %6 = vector.load %arg4[%c0_5, %c0_6] : memref<8x128xf32, #tpu.memory_space<vmem>>, vector<8x128xf32>
    tpu.vector_store %arg4[%c0_5, %c0_6], %5 {strides = array<i32>} : memref<8x128xf32, #tpu.memory_space<vmem>>, vector<8x128xf32>,
    return
  }
  func.func @transform_0(%arg0: i32) -> (i32, i32) {
    %c0_i32 = arith.constant 0 : i32
    %c0_i32_0 = arith.constant 0 : i32
    return %arg0, %c0_i32 : i32, i32
  }
  func.func @transform_1(%arg0: i32) -> (i32, i32) {
    %c0_i32 = arith.constant 0 : i32
    %c0_i32_0 = arith.constant 0 : i32
    %c0_i32_1 = arith.constant 0 : i32
    return %c0_i32, %c0_i32_0 : i32, i32
  }
  func.func @transform_2(%arg0: i32) -> (i32, i32) {
    %c0_i32 = arith.constant 0 : i32
    %c0_i32_0 = arith.constant 0 : i32
    %c0_i32_1 = arith.constant 0 : i32
    return %c0_i32, %c0_i32_0 : i32, i32
  }
  func.func @transform_3(%arg0: i32) -> (i32, i32) {
    %c0_i32 = arith.constant 0 : i32
    %c0_i32_0 = arith.constant 0 : i32
    return %arg0, %c0_i32 : i32, i32
  }
}

</mosaic_0001>

<bundles_post_ra>
// kernel: tpu_custom_call.1
= control target key start
LH: loop header
LB: loop body
LE: loop exit
PB: predicated region body
PF: predicated region fallthrough
CT: control target
= control target key end

     0   :  { %8 = vsyncpa [#allocation3], 0  ;;  %s1516_s0 = inlined_call_operand.hbm [shape: bf16[16,784], index: 0, kind: input, shape index: {}]   ;;  %s1517_s1 = inlined_call_operand.hbm [shape: bf16[784,128], index: 1, kind: input, shape index: {}]   ;;  %s1518_s2 = inlined_call_operand.vmem [shape: f32[1,128], index: 2, kind: input, shape index: {}]   ;;  %s1519_s3 = inlined_call_operand.hbm [shape: f32[16,128], index: 3, kind: output, shape index: {}]  }
   0x1   :  { %10 = vsyncpa [#allocation3 + $0x1], 0 }
   0x2   :  { %11 = vsyncpa [#allocation6], 0 }
   0x3   :  { %12 = vsyncpa [#allocation4], 0 }
   0x4   :  { %14 = vsyncpa [#allocation4 + $0x1], 0  ;;  %s1310_s12 = smov 0   ;;  %s1312_s13 = smov 0  }
   0x5   :  { %s1314_s14 = smov 0   ;;  %s1316_s15 = smov 0  }
   0x6 LB: > { %s1331_s16 = sadd.s32 4294967295, %s1281_s15   ;;  %s889_s17 = sadd.s32 4294967294, %s1281_s15   ;;  %s1281_s15 = sphi %s1316_s15, %s1539_s15   ;;  %s1277_s14 = sphi %s1314_s14, %s1538_s14   ;;  %s1273_s13 = sphi %s1312_s13, %s1537_s13   ;;  %s1269_s12 = sphi %s1310_s12, %s1536_s12  }
   0x7   : > { %p40_p0 = scmp.ne.s32.totalorder %s1273_s13, %s1269_s12  ;;  %p1520_p1 = scmp.eq.s32.totalorder %s1331_s16, 0 }
   0x8   : > { %p112_p3 = scmp.eq.s32.totalorder %s889_s17, 1  ;;  %p890_p5 = scmp.ge.s32.totalorder %s1281_s15, 1 }
   0x9   : > { %p1340_p4 = por %p1520_p1, %p40_p0  ;;  %p119_p7 = scmp.lt.s32.totalorder %s1281_s15, 3 }
   0xa   : > { %p1345_p6 = por %p112_p3, %p40_p0  ;;  %s1283_s21 = smov [#allocation5]  }
   0xb   : > { %s1523_s18 = scalar_select %p1340_p4, 1, 0 }
   0xc   : > { %s1524_s19 = scalar_select %p1345_p6, 1, 0 }
   0xd   : > { %p1350_p8 = pnand %p890_p5, %p119_p7  ;;  %s131_s22 = sshll.u32 %s1283_s21, 4  ;;  %s1354_s22 = int_to_ptr.vmem [resolvable:$true] %s131_s22 }
   0xe   : > { %s1366_s24 = sadd.s32 1, %s1281_s15   ;;  %s27_s25 = sadd.s32 1, %s1277_s14 }
   0xf   : > { %s1525_s20 = scalar_select %p1350_p8, 1, 0 }
  0x10   : > { %p1044_p9 = pneg %p1350_p8  ;;  %s24_s26 = ssub.s32 %s1281_s15, %s1366_s24 }
  0x11   : > { %s1153_s29 = scalar_lea.hbm %s1517_s1, 6272 }
  0x12   : > { %p1361_p11 = pnand %p1044_p9, %p1520_p1  ;;  %p1154_p12 = scmp.ne.s32.totalorder %s1517_s1, %s1153_s29 }
  0x13   : > { %p1160_p5 = scmp.lt.u32.totalorder %s1153_s29, %s1517_s1 }
  0x14   : > { %p1155_p13 = pneg %p1361_p11 }
  0x16   : > { %p1156_p0 = pnand %p1155_p13, %p1154_p12 }
  0x18   : > { %p1157_p3 = pneg %p1156_p0 }
  0x1a   : > { %p1162_p7 = pnand %p1160_p5, %p1157_p3 }
  0x1c   : > { %1165 = shalt.err (!%p1162_p7)
}
  0x1d   : > { %s1166_s7 = scalar_lea.vmem %s1354_s22, 6272  ;;  %p1174_p2 = scmp.lt.s32.totalorder %s1354_s22, %s1354_s22 }
  0x1e   : > { %p1167_p9 = scmp.ne.s32.totalorder %s1354_s22, %s1166_s7  ;;  %p1175_p6 = scmp.lt.s32.totalorder %s1166_s7, %s1166_s7 }
  0x20   : > { %p1169_p10 = pnand %p1167_p9, %p1155_p13  ;;  %p1176_p4 = por %p1175_p6, %p1174_p2 }
  0x22   : > { %p1170_p1 = pneg %p1169_p10 }
  0x24   : > { %p1177_p8 = pnand %p1176_p4, %p1170_p1 }
  0x26   : > { %1180 = shalt.err (!%p1177_p8)
}
  0x27   : > { %s1284_s8 = smov 64   ;;  %s1285_s9 = smov 4  }
  0x28   : > { %1047 = dma.hbm_to_vmem [thread:$0]  (!%p1361_p11), %s1517_s1, 6272, %s1354_s22, [#allocation6], %s1284_s8, %s1284_s8, %s1285_s9  }
  0x29   : > { %p25_p2 = scmp.eq.s32.totalorder %s24_s26, 0  ;;  %p34_p1 = scmp.ne.s32.totalorder %s1277_s14, %s1273_s13 }
  0x2a   : > { %p35_p4 = scmp.eq.s32.totalorder %s1281_s15, 0  ;;  %p1057_p6 = scmp.lt.s32.totalorder %s1281_s15, 2 }
  0x2b   : > { %s1397_s17 = scalar_select %p25_p2, %s1277_s14, %s27_s25  }
  0x2c   : > { %p36_p8 = por %p35_p4, %p34_p1  ;;  %p1527_p10 = scmp.eq.s32.totalorder %s1331_s16, 1 }
  0x2d   : > { %s148_s27 = sand.u32 1, %s1277_s14   ;;  %s1034_s28 = smul.u32 448, %s1281_s15 }
  0x2e   : > { %p1401_p12 = por %p1527_p10, %p34_p1  ;;  %s1033_s29 = smul.u32 28, %s148_s27 }
  0x2f   : > { %p1407_p13 = pnand %p1057_p6, %p36_p8  ;;  %s1414_s25 = scalar_lea.hbm %s1516_s0, %s1034_s28 }
  0x30   : > { %s152_s30 = scalar_lea.vmem [#allocation2], %s1033_s29  ;;  %s149_s5 = scalar_lea.sflag [#allocation3], %s148_s27 }
  0x31   : > { %s160_s4 = sshll.u32 %s152_s30, 4  ;;  %s1181_s6 = scalar_lea.hbm %s1414_s25, 448  ;;  %s1416_s4 = int_to_ptr.vmem [resolvable:$true] %s160_s4 }
  0x32   : > { %p1182_p11 = scmp.ne.s32.totalorder %s1414_s25, %s1181_s6  ;;  %p1183_p0 = pneg %p1407_p13 }
  0x33   : > { %s1186_s9 = scalar_lea.hbm %s1516_s0, 896  ;;  %p1187_p7 = scmp.lt.u32.totalorder %s1414_s25, %s1516_s0 }
  0x34   : > { %p1184_p3 = pnand %p1183_p0, %p1182_p11  ;;  %p1188_p9 = scmp.lt.u32.totalorder %s1186_s9, %s1181_s6 }
  0x35   : > { %p1190_p1 = scmp.lt.u32.totalorder %s1181_s6, %s1414_s25 }
  0x36   : > { %p1185_p5 = pneg %p1184_p3  ;;  %p1189_p2 = por %p1188_p9, %p1187_p7 }
  0x38   : > { %p1191_p4 = por %p1190_p1, %p1189_p2 }
  0x3a   : > { %p1192_p6 = pnand %p1191_p4, %p1185_p5 }
  0x3c   : > { %1195 = shalt.err (!%p1192_p6)
}
  0x3d   : > { %s1196_s27 = scalar_lea.vmem %s1416_s4, 448  ;;  %s1286_s28 = smov [#allocation2]  }
  0x3e   : > { %p1197_p8 = scmp.ne.s32.totalorder %s1416_s4, %s1196_s27  ;;  %s1201_s29 = sshll.u32 %s1286_s28, 4  ;;  %s1202_s29 = int_to_ptr.vmem [resolvable:$false] %s1201_s29 }
  0x3f   : > { %s1203_s22 = scalar_lea.vmem %s1202_s29, 896  ;;  %p1204_p3 = scmp.lt.s32.totalorder %s1416_s4, %s1202_s29 }
  0x40   : > { %p1199_p10 = pnand %p1197_p8, %p1183_p0  ;;  %p1205_p7 = scmp.lt.s32.totalorder %s1203_s22, %s1196_s27 }
  0x42   : > { %p1200_p11 = pneg %p1199_p10  ;;  %p1206_p9 = por %p1205_p7, %p1204_p3 }
  0x44   : > { %p1207_p2 = pnand %p1206_p9, %p1200_p11 }
  0x46   : > { %1210 = shalt.err (!%p1207_p2)
}
  0x47   : > { %1051 = dma.hbm_to_vmem [thread:$0]  (!%p1407_p13), %s1414_s25, 448, %s1416_s4, %s149_s5  }
  0x48   : > { %p1530_p5 = scmp.ne.s32.totalorder %s1525_s20, 0 }
  0x49   : > { %s1446_s26 = sand.u32 (!%p1530_p5), 1, %s1273_s13   ;;  %p1531_p0 = scmp.ne.s32.totalorder (!%p1530_p5), %s1523_s18, 0 }
  0x4a   : > { %169 = sbr.rel (%p1530_p5) target bundleno = 383 (0x17f), region = 32  ;;  %s172_s6 = scalar_lea.sflag (!%p1530_p5), [#allocation3], %s1446_s26 }
  0x4b   : > { %s1035_s30 = smul.u32 (!%p1530_p5), 28, %s1446_s26 }
  0x4d   : > { %s1450_s7 = scalar_lea.vmem (!%p1530_p5), [#allocation2], %s1035_s30 }
  0x51   : > { %1256 = dma.done.wait (%p1531_p0), %s172_s6, 448  }
  0x52   : > { %1258 = vsyncadd (%p1531_p0), %s172_s6, 4294966848  ;;  %p1532_p13 = scmp.eq.s32.totalorder %s1331_s16, 0 }
  0x54   : > { %1260 = dma.done.wait (%p1532_p13), [#allocation6], 6272   ;;  %p1533_p1 = pmov %p1532_p13 }
  0x55   : > { %v1097_v0 = vld [vmem:[#allocation5 + $0x40] sm:$0xff]   ;;  %v1101_v4 = vld [vmem:[#allocation5 + $0x48] sm:$0xff]   ;;  %v1105_v8 = vld [vmem:[#allocation5 + $0x50] sm:$0xff]   ;;  %v1287_v43 = vmov 0.0   ;;  %vm1288_vm0 = vmmov 0   ;;  %vm630_vm1 = vcmask 130048  }
  0x56   : > { %1262 = vsyncadd (%p1533_p1), [#allocation6], 4294961024  ;;  %v1098_v1 = vld [vmem:[#allocation5] sm:$0xff]   ;;  %959 = vmatprep.subr.bf16.mxu0 %v1097_v0  ;;  %v1102_v5 = vld [vmem:[#allocation5 + $0x8] sm:$0xff]   ;;  %s896_s23 = sshll.u32 %s1446_s26, 3  ;;  %s956_s25 = sshll.u32 %s1331_s16, 7 }
  0x57   : > { %v1099_v2 = vld [vmem:[#allocation5 + $0xc0] sm:$0xff]   ;;  %960 = vmatpush3.bf16.msra.mxu0 %v1098_v1  ;;  %v1103_v6 = vld [vmem:[#allocation5 + $0xc8] sm:$0xff]   ;;  %v1106_v9 = vld [vmem:[#allocation5 + $0x10] sm:$0xff]   ;;  %s201_s4 = scalar_lea.vmem [#allocation7], %s896_s23  ;;  %s1472_s10 = scalar_lea.hbm %s1519_s3, %s956_s25 }
  0x58   : > { %v1100_v3 = vld [vmem:[#allocation5 + $0x80] sm:$0xff]   ;;  %981 = vmatprep.subr.bf16.mxu1 %v1099_v2  ;;  %961 = vmatprep.subr.bf16.mxu0 %v1101_v4  ;;  %v1104_v7 = vld [vmem:[#allocation5 + $0x88] sm:$0xff]   ;;  %v1107_v10 = vld [vmem:[#allocation5 + $0xd0] sm:$0xff]   ;;  %s809_s5 = sshll.u32 %s201_s4, 4  ;;  %s796_s11 = scalar_lea.sflag [#allocation4], %s1446_s26  ;;  %s1474_s5 = int_to_ptr.vmem [resolvable:$true] %s809_s5 }
  0x59   : > { %982 = vmatpush3.bf16.msra.mxu1 %v1100_v3  ;;  %v1108_v11 = vld [vmem:[#allocation5 + $0x90] sm:$0xff]   ;;  %v1109_v12 = vld [vmem:[#allocation5 + $0x58] sm:$0xff]   ;;  %v1113_v16 = vld [vmem:[#allocation5 + $0x60] sm:$0xff]   ;;  %s1211_s27 = scalar_lea.vmem %s1474_s5, 128  ;;  %s1289_s16 = smov [#allocation7]  }
  0x5a   : > { %983 = vmatprep.subr.bf16.mxu1 %v1103_v6  ;;  %v1110_v13 = vld [vmem:[#allocation5 + $0x18] sm:$0xff]   ;;  %v1114_v17 = vld [vmem:[#allocation5 + $0x20] sm:$0xff]   ;;  %v1117_v20 = vld [vmem:[#allocation5 + $0x68] sm:$0xff]   ;;  %p1212_p4 = scmp.ne.s32.totalorder %s1474_s5, %s1211_s27  ;;  %s1215_s28 = sshll.u32 %s1289_s16, 4  ;;  %s1216_s28 = int_to_ptr.vmem [resolvable:$false] %s1215_s28 }
  0x5b   : > { %962 = vmatpush3.bf16.msra.mxu0 %v1102_v5  ;;  %v1111_v14 = vld [vmem:[#allocation5 + $0xd8] sm:$0xff]   ;;  %v1115_v18 = vld [vmem:[#allocation5 + $0xe0] sm:$0xff]   ;;  %v1118_v21 = vld [vmem:[#allocation5 + $0x28] sm:$0xff]   ;;  %s1217_s29 = scalar_lea.vmem %s1216_s28, 256  ;;  %p1218_p10 = scmp.lt.s32.totalorder %s1474_s5, %s1216_s28 }
  0x5c   : > { %963 = vmatprep.subr.bf16.mxu0 %v1105_v8  ;;  %v1112_v15 = vld [vmem:[#allocation5 + $0x98] sm:$0xff]   ;;  %v1116_v19 = vld [vmem:[#allocation5 + $0xa0] sm:$0xff]   ;;  %v1119_v22 = vld [vmem:[#allocation5 + $0xe8] sm:$0xff]   ;;  %p1213_p6 = pnand %p1212_p4, %p1401_p12  ;;  %p1219_p11 = scmp.lt.s32.totalorder %s1217_s29, %s1211_s27 }
  0x5d   : > { %984 = vmatpush3.bf16.msra.mxu1 %v1104_v7  ;;  %v1120_v23 = vld [vmem:[#allocation5 + $0xa8] sm:$0xff]   ;;  %v1121_v24 = vld [vmem:[#allocation5 + $0x70] sm:$0xff]   ;;  %v1125_v28 = vld [vmem:[#allocation5 + $0x78] sm:$0xff]  }
  0x5e   : > { %985 = vmatprep.subr.bf16.mxu1 %v1107_v10  ;;  %v1122_v25 = vld [vmem:[#allocation5 + $0x30] sm:$0xff]   ;;  %v1126_v29 = vld [vmem:[#allocation5 + $0x38] sm:$0xff]   ;;  %v203_v31 = vld [vmem:[%s1450_s7] sm:$0xff]  ;;  %p1214_p8 = pneg %p1213_p6  ;;  %p1220_p3 = por %p1219_p11, %p1218_p10 }
  0x5f   : > { %964 = vmatpush3.bf16.msra.mxu0 %v1106_v9  ;;  %v1123_v26 = vld [vmem:[#allocation5 + $0xf0] sm:$0xff]   ;;  %v1127_v30 = vld [vmem:[#allocation5 + $0xf8] sm:$0xff]   ;;  %v898_v32 = vcombine.low %v203_v31, %v203_v31  ;;  %v899_v33 = vcombine.high %v203_v31, %v203_v31  ;;  %v1131_v35 = vld [vmem:[#allocation5 + $0x140] sm:$0xff]  }
  0x60   : > { %965 = vmatprep.subr.bf16.mxu0 %v1109_v12  ;;  %v1124_v27 = vld [vmem:[#allocation5 + $0xb0] sm:$0xff]   ;;  %v1130_v34 = vld [vmem:[#allocation5 + $0xb8] sm:$0xff]   ;;  %v1134_v39 = vld [vmem:[#allocation5 + $0x100] sm:$0xff]   ;;  %p1221_p7 = pnand %p1220_p3, %p1214_p8 }
  0x61   : > { %986 = vmatpush3.bf16.msra.mxu1 %v1108_v11  ;;  %v204_v36 = vld [vmem:[%s1450_s7 + $0x8] sm:$0xff]  ;;  %666 = vmatprep.mubr.bf16.mxu0 %v899_v33  ;;  %v1139_v45 = vld [vmem:[#allocation5 + $0x158] sm:$0xff]   ;;  %v1141_v47 = vld [vmem:[#allocation5 + $0x160] sm:$0xff]  }
  0x62   : > { %987 = vmatprep.subr.bf16.mxu1 %v1111_v14  ;;  %v900_v37 = vcombine.low %v204_v36, %v204_v36  ;;  %v901_v38 = vcombine.high %v204_v36, %v204_v36  ;;  %v1135_v40 = vld [vmem:[#allocation5 + $0x148] sm:$0xff]   ;;  %v1137_v42 = vld [vmem:[#allocation5 + $0x150] sm:$0xff]   ;;  %v1140_v46 = vld [vmem:[#allocation5 + $0x118] sm:$0xff]  }
  0x63   : > { %966 = vmatpush3.bf16.msra.mxu0 %v1110_v13  ;;  %v1136_v41 = vld [vmem:[#allocation5 + $0x108] sm:$0xff]   ;;  %v1138_v44 = vld [vmem:[#allocation5 + $0x110] sm:$0xff]   ;;  %v1142_v48 = vld [vmem:[#allocation5 + $0x120] sm:$0xff]  }
  0x64   : > { %967 = vmatprep.subr.bf16.mxu0 %v1113_v16  ;;  %706 = vmatprep.mubr.bf16.mxu1 %v901_v38  ;;  %v1143_v49 = vld [vmem:[#allocation5 + $0x168] sm:$0xff]   ;;  %v1149_v50 = vld [vmem:[#allocation5 + $0x180] sm:$0xff]   ;;  %v205_v51 = vld [vmem:[%s1450_s7 + $0x10] sm:$0xff] }
  0x65   : > { %988 = vmatpush3.bf16.msra.mxu1 %v1112_v15  ;;  %v903_v52 = vcombine.high %v205_v51, %v205_v51  ;;  %v1152_v53 = vld [vmem:[%s1450_s7 + $0x18] ss:$0 sps:$4 sm:$0xff]   ;;  %v1144_v54 = vld [vmem:[#allocation5 + $0x128] sm:$0xff]   ;;  %v1145_v55 = vld [vmem:[#allocation5 + $0x170] sm:$0xff]   ;;  %v902_v59 = vcombine.low %v205_v51, %v205_v51 }
  0x66   : > { %989 = vmatprep.subr.bf16.mxu1 %v1115_v18  ;;  %v1146_v56 = vld [vmem:[#allocation5 + $0x130] sm:$0xff]   ;;  %v1147_v57 = vld [vmem:[#allocation5 + $0x178] sm:$0xff]   ;;  %v897_v61 = vld [vmem:[%s1518_s2] ss:$0 sm:$0xff] }
  0x67   : > { %968 = vmatpush3.bf16.msra.mxu0 %v1114_v17  ;;  %v1148_v58 = vld [vmem:[#allocation5 + $0x138] sm:$0xff]  }
  0x68   : > { %969 = vmatprep.subr.bf16.mxu0 %v1117_v20 }
  0x69   : > { %990 = vmatpush3.bf16.msra.mxu1 %v1116_v19 }
  0x6a   : > { %991 = vmatprep.subr.bf16.mxu1 %v1119_v22 }
  0x6b   : > { %970 = vmatpush3.bf16.msra.mxu0 %v1118_v21 }
  0x6c   : > { %971 = vmatprep.subr.bf16.mxu0 %v1121_v24 }
  0x6d   : > { %992 = vmatpush3.bf16.msra.mxu1 %v1120_v23 }
  0x6e   : > { %993 = vmatprep.subr.bf16.mxu1 %v1123_v26 }
  0x6f   : > { %972 = vmatpush3.bf16.msra.mxu0 %v1122_v25 }
  0x70   : > { %973 = vmatprep.subr.bf16.mxu0 %v1125_v28 }
  0x71   : > { %994 = vmatpush3.bf16.msra.mxu1 %v1124_v27 }
  0x72   : > { %995 = vmatprep.subr.bf16.mxu1 %v1127_v30 }
  0x73   : > { %974 = vmatpush3.bf16.msra.mxu0 %v1126_v29 }
  0x74   : > { %1003 = vmatprep.subr.bf16.mxu0 %v1131_v35 }
  0x75   : > { %996 = vmatpush3.bf16.msra.mxu1 %v1130_v34 }
  0x76   : > { %667 = vmatmul.mubr.bf16.vlgmr.msra.gmra.mrb[0].mxu0 %v898_v32  ;;  %1027 = vmatprep.subr.bf16.mxu1 %v1287_v43 }
  0x77   : > { %1004 = vmatpush3.bf16.msra.mxu0 %v1134_v39  ;;  %746 = vmatprep.mubr.bf16.mxu0 %v903_v52 }
  0x78   : > { %707 = vmatmul.mubr.bf16.vlgmr.msra.gmra.mrb[0].mxu1 %v900_v37  ;;  %1005 = vmatprep.subr.bf16.mxu0 %v1135_v40 }
  0x79   : > { %1029 = vmatprep.mubr.msk.bf16.mxu1 %vm1288_vm0, %v1287_v43  ;;  %1028 = vmatpush3.bf16.msra.mxu1 %v1149_v50 }
  0x7b   : > { %1006 = vmatpush3.bf16.msra.mxu0 %v1136_v41 }
  0x7c   : > { %1007 = vmatprep.subr.bf16.mxu0 %v1137_v42 }
  0x7f   : > { %1008 = vmatpush3.bf16.msra.mxu0 %v1138_v44 }
  0x80   : > { %1009 = vmatprep.subr.bf16.mxu0 %v1139_v45  ;;  %1030 = vmatmul.mubr.msk.bf16.vlgmr.msra.gmra.mrb[4].mxu1 %vm630_vm1, %v1152_v53 }
  0x83   : > { %1010 = vmatpush3.bf16.msra.mxu0 %v1140_v46 }
  0x84   : > { %1011 = vmatprep.subr.bf16.mxu0 %v1141_v47 }
  0x87   : > { %1012 = vmatpush3.bf16.msra.mxu0 %v1142_v48 }
  0x88   : > { %1013 = vmatprep.subr.bf16.mxu0 %v1143_v49 }
  0x8b   : > { %1014 = vmatpush3.bf16.msra.mxu0 %v1144_v54 }
  0x8c   : > { %1015 = vmatprep.subr.bf16.mxu0 %v1145_v55 }
  0x8f   : > { %1016 = vmatpush3.bf16.msra.mxu0 %v1146_v56 }
  0x90   : > { %1017 = vmatprep.subr.bf16.mxu0 %v1147_v57 }
  0x93   : > { %1018 = vmatpush3.bf16.msra.mxu0 %v1148_v58 }
  0x96   : > { %747 = vmatmul.mubr.bf16.vlgmr.msra.gmra.mrb[4].mxu0 %v902_v59 }
 0x149   : > { %v975_v60 = vpop.f32.mrb[0].mxu0 }
 0x14a   : > { %v976_v62 = vpop.f32.mrb[1].mxu0 }
 0x14b   : > { %v977_v63 = vadd.f32 %v976_v62, %v975_v60  ;;  %v978_v0 = vpop.f32.mrb[2].mxu0  ;;  %v997_v1 = vpop.f32.mrb[0].mxu1 }
 0x14c   : > { %v979_v2 = vpop.f32.mrb[3].mxu0  ;;  %v998_v3 = vpop.f32.mrb[1].mxu1 }
 0x14d   : > { %v669_v4 = vadd.f32 %v977_v63, %v897_v61  ;;  %v999_v5 = vadd.f32 %v998_v3, %v997_v1  ;;  %v1000_v6 = vpop.f32.mrb[2].mxu1 }
 0x14e   : > { %v1001_v7 = vpop.f32.mrb[3].mxu1 }
 0x14f   : > { %v709_v8 = vadd.f32 %v999_v5, %v669_v4 }
 0x153   : > { %v788_v9 = vpop.f32.mrb[4].mxu1 }
 0x154   : > { %v1031_v10 = vpop.f32.mrb[5].mxu1 }
 0x155   : > { %v791_v11 = vpop.f32.mrb[6].mxu1 }
 0x156   : > { %v1032_v12 = vpop.f32.mrb[7].mxu1 }
 0x169   : > { %v1019_v13 = vpop.f32.mrb[4].mxu0 }
 0x16a   : > { %v1020_v14 = vpop.f32.mrb[5].mxu0 }
 0x16b   : > { %v1021_v15 = vadd.f32 %v1020_v14, %v1019_v13  ;;  %v1022_v16 = vpop.f32.mrb[6].mxu0 }
 0x16c   : > { %v1023_v17 = vpop.f32.mrb[7].mxu0 }
 0x16d   : > { %v749_v18 = vadd.f32 %v1021_v15, %v709_v8 }
 0x16f   : > { %v789_v19 = vadd.f32 %v788_v9, %v749_v18 }
 0x171   : > { %794 = vst [vmem:[%s201_s4] sm:$0xff] %v789_v19 }
 0x172   : > { %1224 = shalt.err (!%p1221_p7)
}
 0x173   : > { %s1225_s22 = scalar_lea.hbm %s1472_s10, 128  ;;  %s1229_s6 = scalar_lea.hbm %s1519_s3, 256 }
 0x174   : > { %p1226_p9 = scmp.ne.s32.totalorder %s1472_s10, %s1225_s22  ;;  %p1230_p0 = scmp.lt.u32.totalorder %s1472_s10, %s1519_s3 }
 0x175   : > { %p1231_p13 = scmp.lt.u32.totalorder %s1229_s6, %s1225_s22  ;;  %p1233_p4 = scmp.lt.u32.totalorder %s1225_s22, %s1472_s10 }
 0x176   : > { %p1227_p2 = pnand %p1226_p9, %p1401_p12 }
 0x177   : > { %p1232_p1 = por %p1231_p13, %p1230_p0 }
 0x178   : > { %p1228_p5 = pneg %p1227_p2 }
 0x179   : > { %p1234_p6 = por %p1233_p4, %p1232_p1 }
 0x17b   : > { %p1235_p8 = pnand %p1234_p6, %p1228_p5 }
 0x17d   : > { %1238 = shalt.err (!%p1235_p8)
}
 0x17e   : > { %1042 = dma.vmem_to_hbm [thread:$0]  (%p1401_p12), %s1474_s5, 128, %s1472_s10, %s796_s11  }
 0x17f PF: > { %s821_s20 = sand.u32 1, %s1269_s12   ;;  %p1534_p10 = scmp.ne.s32.totalorder %s1524_s19, 0 }
 0x180   : > { %p1535_p11 = scmp.ge.s32.totalorder %s1281_s15, 2  ;;  %s822_s23 = scalar_lea.sflag [#allocation4], %s821_s20 }
 0x182   : > { %p1053_p3 = pnand %p1535_p11, %p1534_p10 }
 0x184   : > { %1264 = dma.done.wait (!%p1053_p3), %s822_s23, 128  }
 0x185   : > { %1266 = vsyncadd (!%p1053_p3), %s822_s23, 4294967168  ;;  %p17_p7 = scmp.ge.s32.totalorder %s1366_s24, 4   ;;  %s1536_s12 = smov %s1273_s13 }
 0x186   : > { %s1537_s13 = smov %s1277_s14  ;;  %s1538_s14 = smov %s1397_s17 }
 0x187   : > { %s1539_s15 = smov %s1366_s24  ;;  %19 = sbr.rel (!%p17_p7) target bundleno = 6 (0x6), region = 81 }
 0x18e   :  { %827 = vsyncpa [#allocation3], 1 }
 0x18f   :  { %829 = vsyncpa [#allocation3 + $0x1], 1 }
 0x190   :  { %830 = vsyncpa [#allocation6], 1 }
 0x191   :  { %831 = vsyncpa [#allocation4], 1 }
 0x192   :  { %833 = vsyncpa [#allocation4 + $0x1], 1 }

</bundles_post_ra>
